<compile_context>
chip_gen: v7x
topology: tpu7x:2x2x1
jax: 0.10.0
libtpu: 0.0.40
codegen_flags: <defaults>
</compile_context>

<pallas_src>
import math

import jax
import jax.numpy as jnp
from jax.experimental import pallas as pl
from jax.experimental.pallas import tpu as pltpu


def _round_up(x, m):
    return ((x + m - 1) // m) * m


def _aggregator_kernel(h_ref, nei_ref, wh_ref, wn_ref, b_ref, out_ref):
    # h_ref:   (tn, D)     bf16   node features
    # nei_ref: (tn, K*D)   bf16   neighbor messages, lane-flat
    # wh_ref:  (D, Fp)     bf16   W_h
    # wn_ref:  (K*D, Fp)   bf16   W_nei/K tiled K times (MXU performs the K-sum/mean)
    # b_ref:   (1, Fp)     f32    bias
    # out_ref: (tn, Fp)    bf16   activated output
    y = jnp.dot(h_ref[...], wh_ref[...], preferred_element_type=jnp.float32)
    y = y + jnp.dot(nei_ref[...], wn_ref[...], preferred_element_type=jnp.float32)
    y = jnp.maximum(y + b_ref[...], 0.0)            # bias + ReLU in f32 on small tile
    out_ref[...] = y.astype(out_ref.dtype)
    # NOTE: the reference's `norm` (rsqrt of row-sum-of-squares) is dead code —
    # it is never returned — so it is intentionally not computed or emitted.


def prepare_aggregator_params(weight, bias, num_neighbors, *, f_pad=None):
    """One-time weight transform (hoisted out of the per-call hot path).

    weight: (F, 2D) PyTorch Linear weight; bias: (F,).
    Returns (w_h bf16 (D, Fp), w_nei_tiled bf16 (K*D, Fp), bias f32 (1, Fp), D, F, Fp).
    The mean's 1/K is folded into w_nei_tiled; the K-sum happens inside the MXU
    contraction, so the kernel needs no K loop and no D padding.
    """
    F_out, two_d = weight.shape
    assert two_d % 2 == 0
    D = two_d // 2
    K = num_neighbors
    Fp = f_pad if f_pad is not None else _round_up(F_out, 128)

    w = jnp.asarray(weight, jnp.float32)
    wh = jnp.zeros((D, Fp), jnp.float32).at[:, :F_out].set(w[:, :D].T)
    wn_one = w[:, D:].T / K                                   # (D, F), 1/K folded
    wn = jnp.zeros((K * D, Fp), jnp.float32).at[:, :F_out].set(jnp.tile(wn_one, (K, 1)))
    b = jnp.zeros((1, Fp), jnp.float32).at[0, :F_out].set(jnp.asarray(bias, jnp.float32))

    return wh.astype(jnp.bfloat16), wn.astype(jnp.bfloat16), b, D, F_out, Fp


def aggregator_forward(h, nei, w_h, w_nei_tiled, bias_p, out_feats, *,
                       tile_n=None, vmem_budget_bytes=40 << 20,
                       out_dtype=jnp.bfloat16):
    """h: (N, D), nei: (N, K, D); weights from prepare_aggregator_params.

    For best end-to-end performance, pass h/nei already in bf16 (then no cast op
    is emitted at all); otherwise a cast-only (no zero-pad) conversion is done here.
    """
    N, D = h.shape
    K = nei.shape[1]
    KD, Fp = w_nei_tiled.shape
    assert KD == K * D and w_h.shape == (D, Fp) and out_feats <= Fp

    # --- activations: cast-only, no zero-padding, no N padding ---
    h_b = h if h.dtype == jnp.bfloat16 else h.astype(jnp.bfloat16)
    nei_b = nei if nei.dtype == jnp.bfloat16 else nei.astype(jnp.bfloat16)
    nei_flat = nei_b.reshape(N, K * D)                 # contiguous merge (cheap)

    out_itemsize = jnp.dtype(out_dtype).itemsize

    # --- tile selection: big, 8-aligned, VMEM-budgeted (v7x-safe), >= 2 tiles ---
    if tile_n is None:
        tile_n = min(1024, _round_up(N, 8))
    tile_n = max(8, _round_up(tile_n, 8))

    def _vmem_bytes(tn):
        stream = tn * D * 2 + tn * K * D * 2 + tn * Fp * out_itemsize
        resident = D * Fp * 2 + K * D * Fp * 2 + Fp * 4
        return 2 * (stream + resident)                 # double-buffered

    while tile_n > 256 and int(1.25 * _vmem_bytes(tile_n)) > vmem_budget_bytes:
        tile_n //= 2
    tile_n = max(8, _round_up(tile_n, 8))

    grid_n = pl.cdiv(N, tile_n)
    if grid_n == 1 and N > 8:
        # v7x has 2 TensorCores per chip; never run a 1-step parallel grid.
        tile_n = max(8, _round_up(-(-N // 2), 8))
        grid_n = pl.cdiv(N, tile_n)

    # Explicitly enforced scoped-VMEM limit: generous headroom, capped well under
    # v7x's 64 MiB per-TensorCore VMEM.
    vmem_limit = int(min(max(2 * _vmem_bytes(tile_n), 16 << 20), 48 << 20))

    out = pl.pallas_call(
        _aggregator_kernel,
        out_shape=jax.ShapeDtypeStruct((N, Fp), out_dtype),
        grid=(grid_n,),
        in_specs=[
            pl.BlockSpec((tile_n, D), lambda i: (i, 0)),        # h tile (bf16)
            pl.BlockSpec((tile_n, K * D), lambda i: (i, 0)),    # nei tile (bf16, flat)
            pl.BlockSpec((D, Fp), lambda i: (0, 0)),            # W_h (resident)
            pl.BlockSpec((K * D, Fp), lambda i: (0, 0)),        # W_nei tiled (resident)
            pl.BlockSpec((1, Fp), lambda i: (0, 0)),            # bias (resident)
        ],
        out_specs=pl.BlockSpec((tile_n, Fp), lambda i: (i, 0)), # lane-dense output
        compiler_params=pltpu.CompilerParams(
            dimension_semantics=("parallel",),
            vmem_limit_bytes=vmem_limit),
    )(h_b, nei_flat, w_h, w_nei_tiled, bias_p)

    # Slice only when the feature dim is not already lane-aligned (bf16, so cheap).
    if out_feats != Fp:
        out = out[:, :out_feats]
    return {"h": out}


def _reference(h, nei, weight, bias):
    """Pure-JAX f32 reference of the same math."""
    m = jnp.mean(nei, axis=1)
    x = jnp.concatenate([h, m], axis=1)
    y = x @ weight.T + bias
    return jnp.maximum(y, 0.0)


if __name__ == "__main__":
    key = jax.random.PRNGKey(0)
    N, K, D, F_out = 16, 4, 32, 32        # nodes, neighbors, in-feat, out-feat
    in_feats = 2 * D                       # linear sees concat([h, mean(nei)])

    k_h, k_nei, k_w, k_b = jax.random.split(key, 4)

    h = jax.random.normal(k_h, (N, D), dtype=jnp.float32)
    nei = jax.random.normal(k_nei, (N, K, D), dtype=jnp.float32)

    # nn.init.xavier_uniform_(weight, gain=calculate_gain('relu'))
    gain = math.sqrt(2.0)
    bound_w = gain * math.sqrt(6.0 / (in_feats + F_out))
    weight = jax.random.uniform(k_w, (F_out, in_feats), dtype=jnp.float32,
                                minval=-bound_w, maxval=bound_w)
    # nn.Linear default bias init: U(-1/sqrt(fan_in), 1/sqrt(fan_in))
    bound_b = 1.0 / math.sqrt(in_feats)
    bias = jax.random.uniform(k_b, (F_out,), dtype=jnp.float32,
                              minval=-bound_b, maxval=bound_b)

    # One-time weight prep (hoisted out of the forward hot path).
    w_h, w_nei_tiled, bias_p, _, _, _ = prepare_aggregator_params(weight, bias, K)

    out = aggregator_forward(h, nei, w_h, w_nei_tiled, bias_p, F_out)
    jax.block_until_ready(out["h"])

    # bf16 activations/weights/output -> compare with bf16-appropriate tolerance.
    ref = _reference(h, nei, weight, bias)
    got = out["h"].astype(jnp.float32)
    assert got.shape == ref.shape
    assert jnp.allclose(got, ref, atol=1e-1, rtol=5e-2), (
        "mismatch vs reference: max abs diff "
        f"{float(jnp.max(jnp.abs(got - ref)))}")

    print("KERNEL_OK")
</pallas_src>

<mosaic_0001>
module attributes {stable_mosaic.version = 11 : i64} {
  func.func @_aggregator_kernel(%arg0: i32, %arg1: memref<8x32xbf16, #tpu.memory_space<vmem>>, %arg2: memref<8x128xbf16, #tpu.memory_space<vmem>>, %arg3: memref<32x128xbf16, #tpu.memory_space<vmem>>, %arg4: memref<128x128xbf16, #tpu.memory_space<vmem>>, %arg5: memref<1x128xf32, #tpu.memory_space<vmem>>, %arg6: memref<8x128xbf16, #tpu.memory_space<vmem>>) attributes {dimension_semantics = [#tpu.dimension_semantics<parallel>], iteration_bounds = array<i64: 2>, scalar_prefetch = 0 : i64, scratch_operands = 0 : i64, tpu.core_type = #tpu.core_type<tc>, window_params = [{transform_indices = @transform_0, window_bounds = array<i64: 8, 32>}, {transform_indices = @transform_1, window_bounds = array<i64: 8, 128>}, {pipeline_mode = #tpu.pipeline_mode<synchronous>, transform_indices = @transform_2, window_bounds = array<i64: 32, 128>}, {pipeline_mode = #tpu.pipeline_mode<synchronous>, transform_indices = @transform_3, window_bounds = array<i64: 128, 128>}, {pipeline_mode = #tpu.pipeline_mode<synchronous>, transform_indices = @transform_4, window_bounds = array<i64: 1, 128>}, {transform_indices = @transform_5, window_bounds = array<i64: 8, 128>}]} {
    %c0 = arith.constant 0 : index
    %c0_0 = arith.constant 0 : index
    %0 = vector.load %arg1[%c0, %c0_0] : memref<8x32xbf16, #tpu.memory_space<vmem>>, vector<8x32xbf16>
    %c0_1 = arith.constant 0 : index
    %c0_2 = arith.constant 0 : index
    %1 = vector.load %arg3[%c0_1, %c0_2] : memref<32x128xbf16, #tpu.memory_space<vmem>>, vector<32x128xbf16>
    %cst = arith.constant dense<0.000000e+00> : vector<8x128xf32>
    %2 = tpu.matmul %0, %1, %cst {dimension_numbers = #tpu.dot_dimension_numbers<[1], [0], [0], [1], [0, 0, 1, 1], [], []>} : vector<8x32xbf16>, vector<32x128xbf16>, vector<8x128xf32> -> vector<8x128xf32>
    %c0_3 = arith.constant 0 : index
    %c0_4 = arith.constant 0 : index
    %3 = vector.load %arg2[%c0_3, %c0_4] : memref<8x128xbf16, #tpu.memory_space<vmem>>, vector<8x128xbf16>
    %c0_5 = arith.constant 0 : index
    %c0_6 = arith.constant 0 : index
    %4 = vector.load %arg4[%c0_5, %c0_6] : memref<128x128xbf16, #tpu.memory_space<vmem>>, vector<128x128xbf16>
    %cst_7 = arith.constant dense<0.000000e+00> : vector<8x128xf32>
    %5 = tpu.matmul %3, %4, %cst_7 {dimension_numbers = #tpu.dot_dimension_numbers<[1], [0], [0], [1], [0, 0, 1, 1], [], []>} : vector<8x128xbf16>, vector<128x128xbf16>, vector<8x128xf32> -> vector<8x128xf32>
    %6 = arith.addf %2, %5 : vector<8x128xf32>
    %c0_8 = arith.constant 0 : index
    %c0_9 = arith.constant 0 : index
    %7 = vector.load %arg5[%c0_8, %c0_9] : memref<1x128xf32, #tpu.memory_space<vmem>>, vector<1x128xf32>
    %8 = vector.broadcast %7 : vector<1x128xf32> to vector<8x128xf32>
    %9 = arith.addf %6, %8 : vector<8x128xf32>
    %cst_10 = arith.constant 0.000000e+00 : f32
    %10 = vector.broadcast %cst_10 : f32 to vector<8x128xf32>
    %11 = arith.maximumf %9, %10 : vector<8x128xf32>
    %12 = arith.truncf %11 : vector<8x128xf32> to vector<8x128xbf16>
    %c0_11 = arith.constant 0 : index
    %c0_12 = arith.constant 0 : index
    %13 = vector.load %arg6[%c0_11, %c0_12] : memref<8x128xbf16, #tpu.memory_space<vmem>>, vector<8x128xbf16>
    tpu.vector_store %arg6[%c0_11, %c0_12], %12 {strides = array<i32>} : memref<8x128xbf16, #tpu.memory_space<vmem>>, vector<8x128xbf16>,
    return
  }
  func.func @transform_0(%arg0: i32) -> (i32, i32) {
    %c0_i32 = arith.constant 0 : i32
    %c0_i32_0 = arith.constant 0 : i32
    return %arg0, %c0_i32 : i32, i32
  }
  func.func @transform_1(%arg0: i32) -> (i32, i32) {
    %c0_i32 = arith.constant 0 : i32
    %c0_i32_0 = arith.constant 0 : i32
    return %arg0, %c0_i32 : i32, i32
  }
  func.func @transform_2(%arg0: i32) -> (i32, i32) {
    %c0_i32 = arith.constant 0 : i32
    %c0_i32_0 = arith.constant 0 : i32
    %c0_i32_1 = arith.constant 0 : i32
    return %c0_i32, %c0_i32_0 : i32, i32
  }
  func.func @transform_3(%arg0: i32) -> (i32, i32) {
    %c0_i32 = arith.constant 0 : i32
    %c0_i32_0 = arith.constant 0 : i32
    %c0_i32_1 = arith.constant 0 : i32
    return %c0_i32, %c0_i32_0 : i32, i32
  }
  func.func @transform_4(%arg0: i32) -> (i32, i32) {
    %c0_i32 = arith.constant 0 : i32
    %c0_i32_0 = arith.constant 0 : i32
    %c0_i32_1 = arith.constant 0 : i32
    return %c0_i32, %c0_i32_0 : i32, i32
  }
  func.func @transform_5(%arg0: i32) -> (i32, i32) {
    %c0_i32 = arith.constant 0 : i32
    %c0_i32_0 = arith.constant 0 : i32
    return %arg0, %c0_i32 : i32, i32
  }
}

</mosaic_0001>

<bundles_post_ra>
// kernel: tpu_custom_call.1
= control target key start
LH: loop header
LB: loop body
LE: loop exit
PB: predicated region body
PF: predicated region fallthrough
CT: control target
= control target key end

     0   :  { %s1283_s0 = inlined_call_operand.hbm [shape: bf16[16,32], index: 0, kind: input, shape index: {}]   ;;  %s1284_s1 = inlined_call_operand.hbm [shape: bf16[16,128], index: 1, kind: input, shape index: {}]   ;;  %s1285_s2 = inlined_call_operand.hbm [shape: bf16[32,128], index: 2, kind: input, shape index: {}]   ;;  %s1286_s3 = inlined_call_operand.hbm [shape: bf16[128,128], index: 3, kind: input, shape index: {}]   ;;  %s1287_s4 = inlined_call_operand.vmem [shape: f32[1,128], index: 4, kind: input, shape index: {}]   ;;  %s1288_s5 = inlined_call_operand.hbm [shape: bf16[16,128], index: 5, kind: output, shape index: {}]  }
   0x1   :  { %1293 = sst [smem:[#allocation16_spill]] %s1285_s2 }
   0x2   :  { %1294 = sst [smem:[#allocation17_spill]] %s1286_s3 }
   0x3   :  { %10 = vsyncpa [#allocation3], 0 }
   0x4   :  { %12 = vsyncpa [#allocation3 + $0x1], 0 }
   0x5   :  { %13 = vsyncpa [#allocation6], 0 }
   0x6   :  { %15 = vsyncpa [#allocation6 + $0x1], 0 }
   0x7   :  { %16 = vsyncpa [#allocation9], 0 }
   0x8   :  { %17 = vsyncpa [#allocation4], 0 }
   0x9   :  { %19 = vsyncpa [#allocation4 + $0x1], 0  ;;  %s1002_s18 = smov 0   ;;  %s1004_s19 = smov 0  }
   0xa   :  { %s1006_s20 = smov 0   ;;  %s1008_s21 = smov 0  }
   0xb LB: > { %s1023_s22 = sadd.s32 4294967295, %s961_s21   ;;  %s610_s23 = sadd.s32 4294967294, %s961_s21   ;;  %s961_s21 = sphi %s1008_s21, %s1316_s21   ;;  %s957_s20 = sphi %s1006_s20, %s1315_s20   ;;  %s953_s19 = sphi %s1004_s19, %s1314_s19   ;;  %s949_s18 = sphi %s1002_s18, %s1313_s18  }
   0xc   : > { %p45_p0 = scmp.ne.s32.totalorder %s953_s19, %s949_s18  ;;  %p1289_p1 = scmp.eq.s32.totalorder %s1023_s22, 0 }
   0xd   : > { %p164_p3 = scmp.eq.s32.totalorder %s610_s23, 1  ;;  %p611_p5 = scmp.ge.s32.totalorder %s961_s21, 1 }
   0xe   : > { %p1032_p4 = por %p1289_p1, %p45_p0  ;;  %p171_p7 = scmp.lt.s32.totalorder %s961_s21, 3 }
   0xf   : > { %p1037_p6 = por %p164_p3, %p45_p0  ;;  %s963_s27 = smov [#allocation7]  }
  0x10   : > { %s1295_s24 = scalar_select %p1032_p4, 1, 0 }
  0x11   : > { %s1296_s25 = scalar_select %p1037_p6, 1, 0 }
  0x12   : > { %p1042_p8 = pnand %p611_p5, %p171_p7  ;;  %s183_s28 = sshll.u32 %s963_s27, 4  ;;  %s1046_s28 = int_to_ptr.vmem [resolvable:$true] %s183_s28 }
  0x13   : > { %s964_s30 = smov [#allocation8]   ;;  %s1299_s2 = sld [smem:[#allocation16_spill]] }
  0x14   : > { %s1297_s26 = scalar_select %p1042_p8, 1, 0 }
  0x15   : > { %p695_p9 = pneg %p1042_p8  ;;  %s196_s6 = sshll.u32 %s964_s30, 4  ;;  %s1057_s6 = int_to_ptr.vmem [resolvable:$true] %s196_s6 }
  0x17   : > { %p1053_p11 = pnand %p695_p9, %p1289_p1 }
  0x19   : > { %s767_s9 = scalar_lea.hbm %s1299_s2, 256  ;;  %p769_p13 = pneg %p1053_p11 }
  0x1a   : > { %p768_p12 = scmp.ne.s32.totalorder %s1299_s2, %s767_s9  ;;  %p774_p5 = scmp.lt.u32.totalorder %s767_s9, %s1299_s2 }
  0x1c   : > { %p770_p0 = pnand %p769_p13, %p768_p12 }
  0x1e   : > { %p771_p3 = pneg %p770_p0 }
  0x20   : > { %p776_p7 = pnand %p774_p5, %p771_p3 }
  0x22   : > { %779 = shalt.err (!%p776_p7)
}
  0x23   : > { %s780_s14 = scalar_lea.vmem %s1046_s28, 256  ;;  %p788_p2 = scmp.lt.s32.totalorder %s1046_s28, %s1046_s28 }
  0x24   : > { %p781_p9 = scmp.ne.s32.totalorder %s1046_s28, %s780_s14  ;;  %p789_p12 = scmp.lt.s32.totalorder %s780_s14, %s780_s14 }
  0x26   : > { %p783_p10 = pnand %p781_p9, %p769_p13  ;;  %p790_p0 = por %p789_p12, %p788_p2 }
  0x28   : > { %p784_p1 = pneg %p783_p10 }
  0x2a   : > { %p791_p6 = pnand %p790_p0, %p784_p1 }
  0x2c   : > { %794 = shalt.err (!%p791_p6)
}
  0x2d   : > { %s965_s15 = smov 64   ;;  %s966_s16 = smov 4  }
  0x2e   : > { %698 = dma.hbm_to_vmem [thread:$0]  (!%p1053_p11), %s1299_s2, 256, %s1046_s28, [#allocation6], %s965_s15, %s965_s15, %s966_s16  }
  0x2f   : > { %s1300_s3 = sld [smem:[#allocation17_spill]] }
  0x35   : > { %s795_s7 = scalar_lea.hbm %s1300_s3, 1024 }
  0x36   : > { %p796_p2 = scmp.ne.s32.totalorder %s1300_s3, %s795_s7  ;;  %p802_p10 = scmp.lt.u32.totalorder %s795_s7, %s1300_s3 }
  0x38   : > { %p798_p1 = pnand %p796_p2, %p769_p13 }
  0x3a   : > { %p799_p6 = pneg %p798_p1 }
  0x3c   : > { %p804_p3 = pnand %p802_p10, %p799_p6 }
  0x3e   : > { %807 = shalt.err (!%p804_p3)
}
  0x3f   : > { %s808_s28 = scalar_lea.vmem %s1057_s6, 1024  ;;  %p816_p12 = scmp.lt.s32.totalorder %s1057_s6, %s1057_s6 }
  0x40   : > { %p809_p5 = scmp.ne.s32.totalorder %s1057_s6, %s808_s28  ;;  %p817_p0 = scmp.lt.s32.totalorder %s808_s28, %s808_s28 }
  0x42   : > { %p811_p7 = pnand %p809_p5, %p769_p13  ;;  %p818_p2 = por %p817_p0, %p816_p12 }
  0x44   : > { %p812_p9 = pneg %p811_p7 }
  0x46   : > { %p819_p1 = pnand %p818_p2, %p812_p9 }
  0x48   : > { %822 = shalt.err (!%p819_p1)
}
  0x49   : > { %701 = dma.hbm_to_vmem [thread:$0]  (!%p1053_p11), %s1300_s3, 1024, %s1057_s6, [#allocation9], %s965_s15, %s965_s15, %s966_s16  }
  0x4a   : > { %s1112_s14 = sadd.s32 1, %s961_s21   ;;  %s32_s29 = sadd.s32 1, %s957_s20 }
  0x4b   : > { %s29_s17 = ssub.s32 %s961_s21, %s1112_s14  ;;  %p39_p13 = scmp.ne.s32.totalorder %s957_s20, %s953_s19 }
  0x4c   : > { %p30_p6 = scmp.eq.s32.totalorder %s29_s17, 0  ;;  %p40_p10 = scmp.eq.s32.totalorder %s961_s21, 0 }
  0x4d   : > { %p1301_p3 = scmp.eq.s32.totalorder %s1023_s22, 1  ;;  %p715_p7 = scmp.lt.s32.totalorder %s961_s21, 2 }
  0x4e   : > { %s1128_s27 = scalar_select %p30_p6, %s957_s20, %s32_s29  }
  0x4f   : > { %p1122_p5 = por %p1301_p3, %p39_p13  ;;  %p41_p9 = por %p40_p10, %p39_p13 }
  0x50   : > { %s213_s30 = sand.u32 1, %s957_s20   ;;  %s616_s15 = sshll.u32 %s961_s21, 6 }
  0x51   : > { %s1302_s23 = scalar_select %p1122_p5, 1, 0 }
  0x52   : > { %s1131_s6 = sshll.u32 %s213_s30, 2  ;;  %s1137_s8 = scalar_lea.hbm %s1283_s0, %s616_s15 }
  0x53   : > { %s217_s9 = scalar_lea.vmem [#allocation2], %s1131_s6  ;;  %p1142_p11 = pnand %p715_p7, %p41_p9 }
  0x54   : > { %s224_s10 = sshll.u32 %s217_s9, 4  ;;  %s1149_s13 = scalar_lea.hbm %s1284_s1, %s616_s15  ;;  %s1140_s10 = int_to_ptr.vmem [resolvable:$true] %s224_s10 }
  0x55   : > { %s231_s29 = sand.u32 1, %s961_s21   ;;  %s214_s17 = scalar_lea.sflag [#allocation3], %s213_s30 }
  0x56   : > { %s823_s16 = scalar_lea.hbm %s1137_s8, 64  ;;  %p825_p0 = pneg %p1142_p11 }
  0x57   : > { %p824_p12 = scmp.ne.s32.totalorder %s1137_s8, %s823_s16  ;;  %s828_s2 = scalar_lea.hbm %s1283_s0, 128 }
  0x58   : > { %p829_p13 = scmp.lt.u32.totalorder %s1137_s8, %s1283_s0  ;;  %p830_p6 = scmp.lt.u32.totalorder %s828_s2, %s823_s16 }
  0x59   : > { %p826_p2 = pnand %p825_p0, %p824_p12  ;;  %p832_p3 = scmp.lt.u32.totalorder %s823_s16, %s1137_s8 }
  0x5a   : > { %p831_p10 = por %p830_p6, %p829_p13 }
  0x5b   : > { %p827_p1 = pneg %p826_p2 }
  0x5c   : > { %p833_p7 = por %p832_p3, %p831_p10 }
  0x5e   : > { %p834_p9 = pnand %p833_p7, %p827_p1 }
  0x60   : > { %837 = shalt.err (!%p834_p9)
}
  0x61   : > { %s838_s30 = scalar_lea.vmem %s1140_s10, 64  ;;  %s967_s15 = smov [#allocation2]  }
  0x62   : > { %p839_p12 = scmp.ne.s32.totalorder %s1140_s10, %s838_s30  ;;  %s843_s12 = sshll.u32 %s967_s15, 4  ;;  %s844_s12 = int_to_ptr.vmem [resolvable:$false] %s843_s12 }
  0x63   : > { %s845_s3 = scalar_lea.vmem %s844_s12, 128  ;;  %p846_p4 = scmp.lt.s32.totalorder %s1140_s10, %s844_s12 }
  0x64   : > { %p841_p2 = pnand %p839_p12, %p825_p0  ;;  %p847_p13 = scmp.lt.s32.totalorder %s845_s3, %s838_s30 }
  0x66   : > { %p842_p5 = pneg %p841_p2  ;;  %p848_p6 = por %p847_p13, %p846_p4 }
  0x68   : > { %p849_p10 = pnand %p848_p6, %p842_p5 }
  0x6a   : > { %852 = shalt.err (!%p849_p10)
}
  0x6b   : > { %705 = dma.hbm_to_vmem [thread:$0]  (!%p1142_p11), %s1137_s8, 64, %s1140_s10, %s214_s17  }
  0x6c   : > { %s235_s2 = scalar_lea.vmem [#allocation5], %s1131_s6  ;;  %s232_s7 = scalar_lea.sflag [#allocation6], %s231_s29 }
  0x6d   : > { %s242_s16 = sshll.u32 %s235_s2, 4  ;;  %s853_s9 = scalar_lea.hbm %s1149_s13, 64  ;;  %s243_s16 = int_to_ptr.vmem [resolvable:$true] %s242_s16 }
  0x6e   : > { %p854_p4 = scmp.ne.s32.totalorder %s1149_s13, %s853_s9  ;;  %s858_s15 = scalar_lea.hbm %s1284_s1, 128 }
  0x6f   : > { %p859_p3 = scmp.lt.u32.totalorder %s1149_s13, %s1284_s1  ;;  %p860_p7 = scmp.lt.u32.totalorder %s858_s15, %s853_s9 }
  0x70   : > { %p856_p5 = pnand %p854_p4, %p825_p0  ;;  %p862_p12 = scmp.lt.u32.totalorder %s853_s9, %s1149_s13 }
  0x71   : > { %p861_p9 = por %p860_p7, %p859_p3 }
  0x72   : > { %p857_p1 = pneg %p856_p5 }
  0x73   : > { %p863_p2 = por %p862_p12, %p861_p9 }
  0x75   : > { %p864_p13 = pnand %p863_p2, %p857_p1 }
  0x77   : > { %867 = shalt.err (!%p864_p13)
}
  0x78   : > { %s868_s6 = scalar_lea.vmem %s243_s16, 64  ;;  %s968_s8 = smov [#allocation5]  }
  0x79   : > { %p869_p6 = scmp.ne.s32.totalorder %s243_s16, %s868_s6  ;;  %s873_s10 = sshll.u32 %s968_s8, 4  ;;  %s874_s10 = int_to_ptr.vmem [resolvable:$false] %s873_s10 }
  0x7a   : > { %s875_s29 = scalar_lea.vmem %s874_s10, 128  ;;  %p876_p5 = scmp.lt.s32.totalorder %s243_s16, %s874_s10 }
  0x7b   : > { %p871_p10 = pnand %p869_p6, %p825_p0  ;;  %p877_p8 = scmp.lt.s32.totalorder %s875_s29, %s868_s6 }
  0x7d   : > { %p872_p4 = pneg %p871_p10  ;;  %p878_p3 = por %p877_p8, %p876_p5 }
  0x7f   : > { %p879_p7 = pnand %p878_p3, %p872_p4 }
  0x81   : > { %882 = shalt.err (!%p879_p7)
}
  0x82   : > { %708 = dma.hbm_to_vmem [thread:$0]  (!%p1142_p11), %s1149_s13, 64, %s243_s16, %s232_s7  }
  0x83   : > { %p1304_p1 = scmp.ne.s32.totalorder %s1297_s26, 0 }
  0x84   : > { %s1202_s17 = sand.u32 (!%p1304_p1), 1, %s953_s19   ;;  %p1305_p8 = scmp.ne.s32.totalorder (!%p1304_p1), %s1295_s24, 0 }
  0x85   : > { %251 = sbr.rel (%p1304_p1) target bundleno = 419 (0x1a3), region = 40  ;;  %s1205_s2 = sshll.u32 (!%p1304_p1), %s1202_s17, 2 }
  0x86   : > { %s254_s9 = scalar_lea.sflag (!%p1304_p1), [#allocation3], %s1202_s17  ;;  %s257_s28 = scalar_lea.vmem (!%p1304_p1), [#allocation2], %s1205_s2 }
  0x8c   : > { %928 = dma.done.wait (%p1305_p8), %s254_s9, 64  }
  0x8d   : > { %930 = vsyncadd (%p1305_p8), %s254_s9, 4294967232  ;;  %s262_s26 = sand.u32 1, %s1023_s22   ;;  %s266_s13 = scalar_lea.vmem [#allocation5], %s1205_s2 }
  0x8e   : > { %s263_s11 = scalar_lea.sflag [#allocation6], %s262_s26 }
  0x8f   : > { %932 = dma.done.wait (%p1305_p8), %s263_s11, 64  }
  0x90   : > { %934 = vsyncadd (%p1305_p8), %s263_s11, 4294967232  ;;  %p1306_p11 = scmp.eq.s32.totalorder %s1023_s22, 0 }
  0x92   : > { %936 = dma.done.wait (%p1306_p11), [#allocation6], 256   ;;  %p1307_p0 = pmov %p1306_p11 }
  0x94   : > { %938 = vsyncadd (%p1307_p0), [#allocation6], 4294967040  ;;  %p1308_p9 = pmov %p1307_p0 }
  0x95   : > { %p1309_p12 = pmov %p1307_p0 }
  0x96   : > { %940 = dma.done.wait (%p1308_p9), [#allocation9], 1024  }
  0x97   : > { %942 = vsyncadd (%p1309_p12), [#allocation9], 4294966272  ;;  %v969_v0 = vmov 0.0   ;;  %vm970_vm0 = vmmov 0   ;;  %v757_v1 = vld [vmem:[#allocation8] sm:$0xff]   ;;  %v758_v2 = vld [vmem:[#allocation8 + $0x8] sm:$0xff]  }
  0x98   : > { %653 = vmatprep.subr.bf16.mxu0 %v969_v0  ;;  %673 = vmatprep.subr.bf16.mxu1 %v969_v0  ;;  %v759_v3 = vld [vmem:[#allocation8 + $0x10] sm:$0xff]   ;;  %v765_v5 = vld [vmem:[#allocation7 + $0x8] sm:$0xff]   ;;  %v307_v7 = vld [vmem:[%s257_s28] sm:$0xf]  ;;  %vm429_vm1 = vcmask 261120   ;;  %s638_s7 = sshll.u32 %s1023_s22, 6 }
  0x99   : > { %677 = vmatprep.mubr.msk.bf16.mxu1 %vm970_vm0, %v969_v0  ;;  %669 = vmatprep.mubr.msk.bf16.mxu0 %vm970_vm0, %v969_v0  ;;  %v763_v4 = vld [vmem:[#allocation7] sm:$0xff]   ;;  %v760_v6 = vld [vmem:[#allocation8 + $0x18] sm:$0xff]   ;;  %v761_v8 = vld [vmem:[#allocation8 + $0x20] sm:$0xff]   ;;  %s305_s30 = scalar_lea.vmem [#allocation10], %s1205_s2  ;;  %s1239_s6 = scalar_lea.hbm %s1288_s5, %s638_s7 }
  0x9a   : > { %654 = vmatpush3.bf16.msra.mxu0 %v757_v1  ;;  %674 = vmatpush3.bf16.msra.mxu1 %v763_v4  ;;  %v762_v9 = vld [vmem:[#allocation8 + $0x28] sm:$0xff]   ;;  %v764_v10 = vld [vmem:[#allocation8 + $0x30] sm:$0xff]   ;;  %v766_v11 = vld [vmem:[#allocation8 + $0x38] sm:$0xff]   ;;  %s498_s15 = sshll.u32 %s305_s30, 4  ;;  %s485_s8 = scalar_lea.sflag [#allocation4], %s1202_s17  ;;  %s1241_s15 = int_to_ptr.vmem [resolvable:$true] %s498_s15 }
  0x9b   : > { %655 = vmatprep.subr.bf16.mxu0 %v969_v0  ;;  %675 = vmatprep.subr.bf16.mxu1 %v969_v0  ;;  %v312_v12 = vld [vmem:[%s266_s13] sm:$0xf]  ;;  %v636_v18 = vld [vmem:[%s1287_s4] ss:$0 sm:$0xff]  ;;  %s883_s10 = scalar_lea.vmem %s1241_s15, 64  ;;  %p1310_p13 = scmp.ne.s32.totalorder %s1302_s23, 0 }
  0x9c   : > { %p884_p2 = scmp.ne.s32.totalorder %s1241_s15, %s883_s10  ;;  %s971_s22 = smov [#allocation10]  }
  0x9d   : > { %s887_s29 = sshll.u32 %s971_s22, 4  ;;  %s888_s29 = int_to_ptr.vmem [resolvable:$false] %s887_s29 }
  0x9e   : > { %656 = vmatpush3.bf16.msra.mxu0 %v758_v2  ;;  %676 = vmatpush3.bf16.msra.mxu1 %v765_v5  ;;  %p885_p6 = pnand %p884_p2, %p1310_p13  ;;  %s889_s2 = scalar_lea.vmem %s888_s29, 128 }
  0x9f   : > { %657 = vmatprep.subr.bf16.mxu0 %v969_v0  ;;  %p890_p4 = scmp.lt.s32.totalorder %s1241_s15, %s888_s29  ;;  %p891_p5 = scmp.lt.s32.totalorder %s889_s2, %s883_s10 }
  0xa0   : > { %p886_p10 = pneg %p885_p6 }
  0xa1   : > { %678 = vmatmul.mubr.msk.bf16.vlgmr.msra.gmra.mrb[0].mxu1 %vm429_vm1, %v307_v7  ;;  %p892_p3 = por %p891_p5, %p890_p4 }
  0xa2   : > { %658 = vmatpush3.bf16.msra.mxu0 %v759_v3 }
  0xa3   : > { %659 = vmatprep.subr.bf16.mxu0 %v969_v0  ;;  %p893_p7 = pnand %p892_p3, %p886_p10 }
  0xa6   : > { %660 = vmatpush3.bf16.msra.mxu0 %v760_v6 }
  0xa7   : > { %661 = vmatprep.subr.bf16.mxu0 %v969_v0 }
  0xaa   : > { %662 = vmatpush3.bf16.msra.mxu0 %v761_v8 }
  0xab   : > { %663 = vmatprep.subr.bf16.mxu0 %v969_v0 }
  0xae   : > { %664 = vmatpush3.bf16.msra.mxu0 %v762_v9 }
  0xaf   : > { %665 = vmatprep.subr.bf16.mxu0 %v969_v0 }
  0xb2   : > { %666 = vmatpush3.bf16.msra.mxu0 %v764_v10 }
  0xb3   : > { %667 = vmatprep.subr.bf16.mxu0 %v969_v0 }
  0xb6   : > { %668 = vmatpush3.bf16.msra.mxu0 %v766_v11 }
  0xb9   : > { %670 = vmatmul.mubr.bf16.vlgmr.msra.gmra.mrb[0].mxu0 %v312_v12 }
 0x174   : > { %v467_v13 = vpop.f32.mrb[0].mxu1 }
 0x175   : > { %v679_v14 = vpop.f32.mrb[1].mxu1 }
 0x176   : > { %v470_v15 = vpop.f32.mrb[2].mxu1 }
 0x177   : > { %v680_v16 = vpop.f32.mrb[3].mxu1 }
 0x18c   : > { %v411_v17 = vpop.f32.mrb[0].mxu0 }
 0x18d   : > { %v468_v19 = vadd.f32 %v467_v13, %v411_v17  ;;  %v671_v20 = vpop.f32.mrb[1].mxu0 }
 0x18e   : > { %v414_v21 = vpop.f32.mrb[2].mxu0 }
 0x18f   : > { %v480_v22 = vadd.f32 %v636_v18, %v468_v19  ;;  %v672_v23 = vpop.f32.mrb[3].mxu0 }
 0x191   : > { %v481_v24 = vmax.f32 %v480_v22, 0.0 }
 0x193   : > { %v482_v25 = vpack.c.bf16 %v481_v24, %v481_v24 }
 0x195   : > { %483 = vst [vmem:[%s305_s30] sm:$0xf] %v482_v25 }
 0x196   : > { %896 = shalt.err (!%p893_p7)
}
 0x197   : > { %s897_s17 = scalar_lea.hbm %s1239_s6, 64  ;;  %s901_s26 = scalar_lea.hbm %s1288_s5, 128 }
 0x198   : > { %p898_p1 = scmp.ne.s32.totalorder %s1239_s6, %s897_s17  ;;  %p902_p0 = scmp.lt.u32.totalorder %s1239_s6, %s1288_s5 }
 0x199   : > { %p903_p9 = scmp.lt.u32.totalorder %s901_s26, %s897_s17  ;;  %p905_p2 = scmp.lt.u32.totalorder %s897_s17, %s1239_s6 }
 0x19a   : > { %p899_p8 = pnand %p898_p1, %p1310_p13 }
 0x19b   : > { %p904_p12 = por %p903_p9, %p902_p0 }
 0x19c   : > { %p900_p11 = pneg %p899_p8 }
 0x19d   : > { %p906_p6 = por %p905_p2, %p904_p12 }
 0x19f   : > { %p907_p10 = pnand %p906_p6, %p900_p11 }
 0x1a1   : > { %910 = shalt.err (!%p907_p10)
}
 0x1a2   : > { %693 = dma.vmem_to_hbm [thread:$0]  (%p1310_p13), %s1241_s15, 64, %s1239_s6, %s485_s8  }
 0x1a3 PF: > { %s510_s24 = sand.u32 1, %s949_s18   ;;  %p1311_p4 = scmp.ne.s32.totalorder %s1296_s25, 0 }
 0x1a4   : > { %p1312_p5 = scmp.ge.s32.totalorder %s961_s21, 2  ;;  %s511_s16 = scalar_lea.sflag [#allocation4], %s510_s24 }
 0x1a6   : > { %p710_p3 = pnand %p1312_p5, %p1311_p4 }
 0x1a8   : > { %944 = dma.done.wait (!%p710_p3), %s511_s16, 64  }
 0x1a9   : > { %946 = vsyncadd (!%p710_p3), %s511_s16, 4294967232  ;;  %p22_p7 = scmp.ge.s32.totalorder %s1112_s14, 4   ;;  %s1313_s18 = smov %s953_s19 }
 0x1aa   : > { %s1314_s19 = smov %s957_s20  ;;  %s1315_s20 = smov %s1128_s27 }
 0x1ab   : > { %s1316_s21 = smov %s1112_s14  ;;  %24 = sbr.rel (!%p22_p7) target bundleno = 11 (0xb), region = 106 }
 0x1b2   :  { %516 = vsyncpa [#allocation3], 1 }
 0x1b3   :  { %518 = vsyncpa [#allocation3 + $0x1], 1 }
 0x1b4   :  { %519 = vsyncpa [#allocation6], 1 }
 0x1b5   :  { %521 = vsyncpa [#allocation6 + $0x1], 1 }
 0x1b6   :  { %522 = vsyncpa [#allocation9], 1 }
 0x1b7   :  { %523 = vsyncpa [#allocation4], 1 }
 0x1b8   :  { %525 = vsyncpa [#allocation4 + $0x1], 1 }

</bundles_post_ra>
